<compile_context>
chip_gen: v7x
topology: tpu7x:2x2x1
jax: 0.10.0
libtpu: 0.0.40
codegen_flags: <defaults>
</compile_context>

<pallas_src>
import math
import functools

import jax
import jax.numpy as jnp
import numpy as np
from jax.experimental import pallas as pl
from jax.experimental.pallas import tpu as pltpu

# ----------------------------- configuration --------------------------------
SEQ = 8          # L
BATCH = 2        # N
D_MODEL = 32     # E
N_HEAD = 4
HEAD_DIM = D_MODEL // N_HEAD
HIDDEN = 4 * D_MODEL
LN_EPS = 1e-5


# ------------------------------- kernel -------------------------------------
def _block_kernel(x_ref, vecs_ref,
                  w_in_t_ref, w_out_t_ref, w_fc_t_ref, w_proj_t_ref,
                  out_ref,
                  *, seq, batch, d_model, n_head, head_dim, hidden):
    D, S = d_model, seq

    x = x_ref[...].astype(jnp.float32)                  # (B*S, D)

    # Packed small vectors: one (8, 128) slab, one row per vector.
    ln1_w   = vecs_ref[0:1, :D]
    ln1_bia = vecs_ref[1:2, :D]
    ln2_w   = vecs_ref[2:3, :D]
    ln2_bia = vecs_ref[3:4, :D]
    b_in    = vecs_ref[4:5, :3 * D]
    b_out   = vecs_ref[5:6, :D]
    b_fc    = vecs_ref[6:7, :hidden]
    b_proj  = vecs_ref[7:8, :D]

    def layernorm(v, g, b):
        mu = jnp.mean(v, axis=-1, keepdims=True)
        var = jnp.mean((v - mu) ** 2, axis=-1, keepdims=True)
        return (v - mu) * jax.lax.rsqrt(var + LN_EPS) * g + b

    # ---- LN1 + QKV projection (all batch rows at once) ----------------------
    ln1 = layernorm(x, ln1_w, ln1_bia)                                  # (B*S, D)
    qkv = jnp.dot(ln1, w_in_t_ref[...],
                  preferred_element_type=jnp.float32) + b_in            # (B*S, 3D)

    scale = 1.0 / math.sqrt(head_dim)
    q = qkv[:, 0:D] * scale                                             # scaled once
    k = qkv[:, D:2 * D]
    v = qkv[:, 2 * D:3 * D]

    # ---- multi-head self-attention; out-projection folded into head loop ----
    per_batch = []
    for b in range(batch):                                              # static, B=2
        r0, r1 = b * S, (b + 1) * S
        acc = None
        for h in range(n_head):                                         # static, H=4
            c0, c1 = h * head_dim, (h + 1) * head_dim
            qh = q[r0:r1, c0:c1]                                        # (S, Dh)
            kh = k[r0:r1, c0:c1]
            vh = v[r0:r1, c0:c1]
            s = jnp.dot(qh, kh.T, preferred_element_type=jnp.float32)   # (S, S)
            s = s - jnp.max(s, axis=-1, keepdims=True)
            p = jnp.exp(s)
            p = p * pl.reciprocal(jnp.sum(p, axis=-1, keepdims=True),
                                  approx=False)
            oh = jnp.dot(p, vh, preferred_element_type=jnp.float32)     # (S, Dh)
            proj = jnp.dot(oh, w_out_t_ref[c0:c1, :],
                           preferred_element_type=jnp.float32)          # (S, D)
            acc = proj if acc is None else acc + proj
        per_batch.append(acc)
    attn_out = jnp.concatenate(per_batch, axis=0) + b_out               # (B*S, D)

    x1 = x + attn_out                                                   # residual 1

    # ---- LN2 + MLP (QuickGELU) ----------------------------------------------
    ln2 = layernorm(x1, ln2_w, ln2_bia)
    hdn = jnp.dot(ln2, w_fc_t_ref[...],
                  preferred_element_type=jnp.float32) + b_fc            # (B*S, 4D)
    hdn = hdn * jax.nn.sigmoid(1.702 * hdn)                             # QuickGELU
    mlp_out = jnp.dot(hdn, w_proj_t_ref[...],
                      preferred_element_type=jnp.float32) + b_proj      # (B*S, D)

    out_ref[...] = (x1 + mlp_out).astype(out_ref.dtype)                 # residual 2


# ------------------------------- wrapper -------------------------------------
def residual_attention_block(x, params):
    """x: (SEQ, BATCH, D_MODEL) -> same shape (PyTorch (L, N, E) layout)."""
    S, B, D = x.shape
    H, Dh, F = N_HEAD, HEAD_DIM, HIDDEN

    # Batch-major contiguous slab: (B*S, D) maps cleanly onto (sublane, lane).
    x2d = jnp.transpose(x, (1, 0, 2)).reshape(B * S, D).astype(jnp.float32)

    # Pack all small vectors into one (8, 128) f32 operand (single vreg tile).
    W = max(F, 3 * D, 128)

    def row(v):
        v = v.astype(jnp.float32).reshape(-1)
        return jnp.pad(v, (0, W - v.shape[0]))

    vecs = jnp.stack([
        row(params["ln1_g"]), row(params["ln1_b"]),
        row(params["ln2_g"]), row(params["ln2_b"]),
        row(params["b_in"]),  row(params["b_out"]),
        row(params["b_fc"]),  row(params["b_proj"]),
    ], axis=0)                                                # (8, 128)

    ins = (
        x2d, vecs,
        params["w_in"].T.astype(jnp.float32),                 # (D, 3D)
        params["w_out"].T.astype(jnp.float32),                # (D, D)
        params["w_fc"].T.astype(jnp.float32),                 # (D, F)
        params["w_proj"].T.astype(jnp.float32),               # (F, D)
    )

    kernel = functools.partial(_block_kernel, seq=S, batch=B, d_model=D,
                               n_head=H, head_dim=Dh, hidden=F)

    out2d = pl.pallas_call(
        kernel,
        out_shape=jax.ShapeDtypeStruct((B * S, D), jnp.float32),
        in_specs=[pl.BlockSpec(memory_space=pltpu.MemorySpace.VMEM)
                  for _ in ins],
        out_specs=pl.BlockSpec(memory_space=pltpu.MemorySpace.VMEM),
    )(*ins)

    return out2d.reshape(B, S, D).transpose(1, 0, 2).astype(x.dtype)


# --------------------------- pure-JAX reference ------------------------------
def reference(x, p):
    def ln(v, g, b):
        mu = v.mean(-1, keepdims=True)
        var = ((v - mu) ** 2).mean(-1, keepdims=True)
        return (v - mu) / jnp.sqrt(var + LN_EPS) * g + b

    S, B, D = x.shape
    H, Dh = N_HEAD, HEAD_DIM

    h1 = ln(x, p["ln1_g"], p["ln1_b"])
    qkv = h1 @ p["w_in"].T + p["b_in"]                      # (S, B, 3D)
    q, k, v = jnp.split(qkv, 3, axis=-1)

    def heads(t):  # (S, B, D) -> (B, H, S, Dh)
        return t.reshape(S, B, H, Dh).transpose(1, 2, 0, 3)

    qh, kh, vh = heads(q), heads(k), heads(v)
    s = jnp.einsum("bhqd,bhkd->bhqk", qh, kh) / math.sqrt(Dh)
    pattn = jax.nn.softmax(s, axis=-1)
    o = jnp.einsum("bhqk,bhkd->bhqd", pattn, vh)            # (B, H, S, Dh)
    o = o.transpose(2, 0, 1, 3).reshape(S, B, D)
    attn_out = o @ p["w_out"].T + p["b_out"]

    x1 = x + attn_out
    h2 = ln(x1, p["ln2_g"], p["ln2_b"])
    m = h2 @ p["w_fc"].T + p["b_fc"]
    m = m * jax.nn.sigmoid(1.702 * m)
    m = m @ p["w_proj"].T + p["b_proj"]
    return x1 + m


# --------------------------------- main --------------------------------------
if __name__ == "__main__":
    key = jax.random.PRNGKey(0)
    ks = jax.random.split(key, 16)

    def init(k, shape, scale=0.05):
        return (scale * jax.random.normal(k, shape)).astype(jnp.float32)

    params = {
        "ln1_g": jnp.ones((D_MODEL,), jnp.float32),
        "ln1_b": jnp.zeros((D_MODEL,), jnp.float32),
        "w_in":  init(ks[0], (3 * D_MODEL, D_MODEL)),   # in_proj_weight
        "b_in":  init(ks[1], (3 * D_MODEL,)),
        "w_out": init(ks[2], (D_MODEL, D_MODEL)),       # out_proj
        "b_out": init(ks[3], (D_MODEL,)),
        "ln2_g": jnp.ones((D_MODEL,), jnp.float32),
        "ln2_b": jnp.zeros((D_MODEL,), jnp.float32),
        "w_fc":  init(ks[4], (HIDDEN, D_MODEL)),        # c_fc
        "b_fc":  init(ks[5], (HIDDEN,)),
        "w_proj": init(ks[6], (D_MODEL, HIDDEN)),       # c_proj
        "b_proj": init(ks[7], (D_MODEL,)),
    }

    x = init(ks[8], (SEQ, BATCH, D_MODEL), scale=1.0)   # (L, N, E)

    out = residual_attention_block(x, params)
    out = jax.block_until_ready(out)

    ref = reference(x, params)
    np.testing.assert_allclose(np.asarray(out), np.asarray(ref),
                               rtol=1e-4, atol=1e-4)

    print("KERNEL_OK")
</pallas_src>

<mosaic_0001>
module attributes {stable_mosaic.version = 11 : i64} {
  func.func @_block_kernel(%arg0: memref<16x32xf32, #tpu.memory_space<vmem>>, %arg1: memref<8x128xf32, #tpu.memory_space<vmem>>, %arg2: memref<32x96xf32, #tpu.memory_space<vmem>>, %arg3: memref<32x32xf32, #tpu.memory_space<vmem>>, %arg4: memref<32x128xf32, #tpu.memory_space<vmem>>, %arg5: memref<128x32xf32, #tpu.memory_space<vmem>>, %arg6: memref<16x32xf32, #tpu.memory_space<vmem>>) attributes {dimension_semantics = [], scalar_prefetch = 0 : i64, scratch_operands = 0 : i64, tpu.core_type = #tpu.core_type<tc>} {
    %c0 = arith.constant 0 : index
    %c0_0 = arith.constant 0 : index
    %0 = vector.load %arg0[%c0, %c0_0] : memref<16x32xf32, #tpu.memory_space<vmem>>, vector<16x32xf32>
    %c0_1 = arith.constant 0 : index
    %c0_2 = arith.constant 0 : index
    %1 = vector.load %arg1[%c0_1, %c0_2] : memref<8x128xf32, #tpu.memory_space<vmem>>, vector<1x32xf32>
    %c1 = arith.constant 1 : index
    %c0_3 = arith.constant 0 : index
    %2 = vector.load %arg1[%c1, %c0_3] : memref<8x128xf32, #tpu.memory_space<vmem>>, vector<1x32xf32>
    %c2 = arith.constant 2 : index
    %c0_4 = arith.constant 0 : index
    %3 = vector.load %arg1[%c2, %c0_4] : memref<8x128xf32, #tpu.memory_space<vmem>>, vector<1x32xf32>
    %c3 = arith.constant 3 : index
    %c0_5 = arith.constant 0 : index
    %4 = vector.load %arg1[%c3, %c0_5] : memref<8x128xf32, #tpu.memory_space<vmem>>, vector<1x32xf32>
    %c4 = arith.constant 4 : index
    %c0_6 = arith.constant 0 : index
    %5 = vector.load %arg1[%c4, %c0_6] : memref<8x128xf32, #tpu.memory_space<vmem>>, vector<1x96xf32>
    %c5 = arith.constant 5 : index
    %c0_7 = arith.constant 0 : index
    %6 = vector.load %arg1[%c5, %c0_7] : memref<8x128xf32, #tpu.memory_space<vmem>>, vector<1x32xf32>
    %c6 = arith.constant 6 : index
    %c0_8 = arith.constant 0 : index
    %7 = vector.load %arg1[%c6, %c0_8] : memref<8x128xf32, #tpu.memory_space<vmem>>, vector<1x128xf32>
    %c7 = arith.constant 7 : index
    %c0_9 = arith.constant 0 : index
    %8 = vector.load %arg1[%c7, %c0_9] : memref<8x128xf32, #tpu.memory_space<vmem>>, vector<1x32xf32>
    %cst = arith.constant dense<0.000000e+00> : vector<16xf32>
    %9 = vector.multi_reduction <add>, %0, %cst [1] : vector<16x32xf32> to vector<16xf32>
    %10 = vector.shape_cast %9 : vector<16xf32> to vector<16x1xf32>
    %cst_10 = arith.constant 3.200000e+01 : f32
    %11 = vector.broadcast %cst_10 : f32 to vector<16x1xf32>
    %12 = arith.divf %10, %11 : vector<16x1xf32>
    %13 = vector.broadcast %12 : vector<16x1xf32> to vector<16x32xf32>
    %14 = arith.subf %0, %13 : vector<16x32xf32>
    %15 = arith.mulf %14, %14 : vector<16x32xf32>
    %cst_11 = arith.constant dense<0.000000e+00> : vector<16xf32>
    %16 = vector.multi_reduction <add>, %15, %cst_11 [1] : vector<16x32xf32> to vector<16xf32>
    %17 = vector.shape_cast %16 : vector<16xf32> to vector<16x1xf32>
    %cst_12 = arith.constant 3.200000e+01 : f32
    %18 = vector.broadcast %cst_12 : f32 to vector<16x1xf32>
    %19 = arith.divf %17, %18 : vector<16x1xf32>
    %20 = vector.broadcast %12 : vector<16x1xf32> to vector<16x32xf32>
    %21 = arith.subf %0, %20 : vector<16x32xf32>
    %cst_13 = arith.constant 9.99999974E-6 : f32
    %22 = vector.broadcast %cst_13 : f32 to vector<16x1xf32>
    %23 = arith.addf %19, %22 : vector<16x1xf32>
    %24 = math.rsqrt %23 : vector<16x1xf32>
    %25 = vector.broadcast %24 : vector<16x1xf32> to vector<16x32xf32>
    %26 = arith.mulf %21, %25 : vector<16x32xf32>
    %27 = vector.broadcast %1 : vector<1x32xf32> to vector<16x32xf32>
    %28 = arith.mulf %26, %27 : vector<16x32xf32>
    %29 = vector.broadcast %2 : vector<1x32xf32> to vector<16x32xf32>
    %30 = arith.addf %28, %29 : vector<16x32xf32>
    %c0_14 = arith.constant 0 : index
    %c0_15 = arith.constant 0 : index
    %31 = vector.load %arg2[%c0_14, %c0_15] : memref<32x96xf32, #tpu.memory_space<vmem>>, vector<32x96xf32>
    %cst_16 = arith.constant dense<0.000000e+00> : vector<16x96xf32>
    %32 = tpu.matmul %30, %31, %cst_16 {dimension_numbers = #tpu.dot_dimension_numbers<[1], [0], [0], [1], [0, 0, 1, 1], [], []>} : vector<16x32xf32>, vector<32x96xf32>, vector<16x96xf32> -> vector<16x96xf32>
    %33 = vector.broadcast %5 : vector<1x96xf32> to vector<16x96xf32>
    %34 = arith.addf %32, %33 : vector<16x96xf32>
    %35 = vector.extract_strided_slice %34 {offsets = [0, 0], sizes = [16, 32], strides = [1, 1]} : vector<16x96xf32> to vector<16x32xf32>
    %cst_17 = arith.constant 0.353553385 : f32
    %36 = vector.broadcast %cst_17 : f32 to vector<16x32xf32>
    %37 = arith.mulf %35, %36 : vector<16x32xf32>
    %38 = vector.extract_strided_slice %34 {offsets = [0, 32], sizes = [16, 32], strides = [1, 1]} : vector<16x96xf32> to vector<16x32xf32>
    %39 = vector.extract_strided_slice %34 {offsets = [0, 64], sizes = [16, 32], strides = [1, 1]} : vector<16x96xf32> to vector<16x32xf32>
    %40 = vector.extract_strided_slice %37 {offsets = [0, 0], sizes = [8, 8], strides = [1, 1]} : vector<16x32xf32> to vector<8x8xf32>
    %41 = vector.extract_strided_slice %38 {offsets = [0, 0], sizes = [8, 8], strides = [1, 1]} : vector<16x32xf32> to vector<8x8xf32>
    %42 = vector.extract_strided_slice %39 {offsets = [0, 0], sizes = [8, 8], strides = [1, 1]} : vector<16x32xf32> to vector<8x8xf32>
    %43 = tpu.transpose %41, [1, 0] : vector<8x8xf32> -> vector<8x8xf32>
    %cst_18 = arith.constant dense<0.000000e+00> : vector<8x8xf32>
    %44 = tpu.matmul %40, %43, %cst_18 {dimension_numbers = #tpu.dot_dimension_numbers<[1], [0], [0], [1], [0, 0, 1, 1], [], []>} : vector<8x8xf32>, vector<8x8xf32>, vector<8x8xf32> -> vector<8x8xf32>
    %cst_19 = arith.constant dense<0xFF800000> : vector<8xf32>
    %45 = vector.multi_reduction <maximumf>, %44, %cst_19 [1] : vector<8x8xf32> to vector<8xf32>
    %46 = vector.shape_cast %45 : vector<8xf32> to vector<8x1xf32>
    %47 = vector.broadcast %46 : vector<8x1xf32> to vector<8x8xf32>
    %48 = arith.subf %44, %47 : vector<8x8xf32>
    %49 = math.exp %48 : vector<8x8xf32>
    %cst_20 = arith.constant dense<0.000000e+00> : vector<8xf32>
    %50 = vector.multi_reduction <add>, %49, %cst_20 [1] : vector<8x8xf32> to vector<8xf32>
    %51 = vector.shape_cast %50 : vector<8xf32> to vector<8x1xf32>
    %52 = tpu.reciprocal %51 : vector<8x1xf32> -> vector<8x1xf32>
    %53 = vector.broadcast %52 : vector<8x1xf32> to vector<8x8xf32>
    %54 = arith.mulf %49, %53 : vector<8x8xf32>
    %cst_21 = arith.constant dense<0.000000e+00> : vector<8x8xf32>
    %55 = tpu.matmul %54, %42, %cst_21 {dimension_numbers = #tpu.dot_dimension_numbers<[1], [0], [0], [1], [0, 0, 1, 1], [], []>} : vector<8x8xf32>, vector<8x8xf32>, vector<8x8xf32> -> vector<8x8xf32>
    %c0_22 = arith.constant 0 : index
    %c0_23 = arith.constant 0 : index
    %56 = vector.load %arg3[%c0_22, %c0_23] : memref<32x32xf32, #tpu.memory_space<vmem>>, vector<8x32xf32>
    %cst_24 = arith.constant dense<0.000000e+00> : vector<8x32xf32>
    %57 = tpu.matmul %55, %56, %cst_24 {dimension_numbers = #tpu.dot_dimension_numbers<[1], [0], [0], [1], [0, 0, 1, 1], [], []>} : vector<8x8xf32>, vector<8x32xf32>, vector<8x32xf32> -> vector<8x32xf32>
    %58 = vector.extract_strided_slice %37 {offsets = [0, 8], sizes = [8, 8], strides = [1, 1]} : vector<16x32xf32> to vector<8x8xf32>
    %59 = vector.extract_strided_slice %38 {offsets = [0, 8], sizes = [8, 8], strides = [1, 1]} : vector<16x32xf32> to vector<8x8xf32>
    %60 = vector.extract_strided_slice %39 {offsets = [0, 8], sizes = [8, 8], strides = [1, 1]} : vector<16x32xf32> to vector<8x8xf32>
    %61 = tpu.transpose %59, [1, 0] : vector<8x8xf32> -> vector<8x8xf32>
    %cst_25 = arith.constant dense<0.000000e+00> : vector<8x8xf32>
    %62 = tpu.matmul %58, %61, %cst_25 {dimension_numbers = #tpu.dot_dimension_numbers<[1], [0], [0], [1], [0, 0, 1, 1], [], []>} : vector<8x8xf32>, vector<8x8xf32>, vector<8x8xf32> -> vector<8x8xf32>
    %cst_26 = arith.constant dense<0xFF800000> : vector<8xf32>
    %63 = vector.multi_reduction <maximumf>, %62, %cst_26 [1] : vector<8x8xf32> to vector<8xf32>
    %64 = vector.shape_cast %63 : vector<8xf32> to vector<8x1xf32>
    %65 = vector.broadcast %64 : vector<8x1xf32> to vector<8x8xf32>
    %66 = arith.subf %62, %65 : vector<8x8xf32>
    %67 = math.exp %66 : vector<8x8xf32>
    %cst_27 = arith.constant dense<0.000000e+00> : vector<8xf32>
    %68 = vector.multi_reduction <add>, %67, %cst_27 [1] : vector<8x8xf32> to vector<8xf32>
    %69 = vector.shape_cast %68 : vector<8xf32> to vector<8x1xf32>
    %70 = tpu.reciprocal %69 : vector<8x1xf32> -> vector<8x1xf32>
    %71 = vector.broadcast %70 : vector<8x1xf32> to vector<8x8xf32>
    %72 = arith.mulf %67, %71 : vector<8x8xf32>
    %cst_28 = arith.constant dense<0.000000e+00> : vector<8x8xf32>
    %73 = tpu.matmul %72, %60, %cst_28 {dimension_numbers = #tpu.dot_dimension_numbers<[1], [0], [0], [1], [0, 0, 1, 1], [], []>} : vector<8x8xf32>, vector<8x8xf32>, vector<8x8xf32> -> vector<8x8xf32>
    %c8 = arith.constant 8 : index
    %c0_29 = arith.constant 0 : index
    %74 = vector.load %arg3[%c8, %c0_29] : memref<32x32xf32, #tpu.memory_space<vmem>>, vector<8x32xf32>
    %cst_30 = arith.constant dense<0.000000e+00> : vector<8x32xf32>
    %75 = tpu.matmul %73, %74, %cst_30 {dimension_numbers = #tpu.dot_dimension_numbers<[1], [0], [0], [1], [0, 0, 1, 1], [], []>} : vector<8x8xf32>, vector<8x32xf32>, vector<8x32xf32> -> vector<8x32xf32>
    %76 = arith.addf %57, %75 : vector<8x32xf32>
    %77 = vector.extract_strided_slice %37 {offsets = [0, 16], sizes = [8, 8], strides = [1, 1]} : vector<16x32xf32> to vector<8x8xf32>
    %78 = vector.extract_strided_slice %38 {offsets = [0, 16], sizes = [8, 8], strides = [1, 1]} : vector<16x32xf32> to vector<8x8xf32>
    %79 = vector.extract_strided_slice %39 {offsets = [0, 16], sizes = [8, 8], strides = [1, 1]} : vector<16x32xf32> to vector<8x8xf32>
    %80 = tpu.transpose %78, [1, 0] : vector<8x8xf32> -> vector<8x8xf32>
    %cst_31 = arith.constant dense<0.000000e+00> : vector<8x8xf32>
    %81 = tpu.matmul %77, %80, %cst_31 {dimension_numbers = #tpu.dot_dimension_numbers<[1], [0], [0], [1], [0, 0, 1, 1], [], []>} : vector<8x8xf32>, vector<8x8xf32>, vector<8x8xf32> -> vector<8x8xf32>
    %cst_32 = arith.constant dense<0xFF800000> : vector<8xf32>
    %82 = vector.multi_reduction <maximumf>, %81, %cst_32 [1] : vector<8x8xf32> to vector<8xf32>
    %83 = vector.shape_cast %82 : vector<8xf32> to vector<8x1xf32>
    %84 = vector.broadcast %83 : vector<8x1xf32> to vector<8x8xf32>
    %85 = arith.subf %81, %84 : vector<8x8xf32>
    %86 = math.exp %85 : vector<8x8xf32>
    %cst_33 = arith.constant dense<0.000000e+00> : vector<8xf32>
    %87 = vector.multi_reduction <add>, %86, %cst_33 [1] : vector<8x8xf32> to vector<8xf32>
    %88 = vector.shape_cast %87 : vector<8xf32> to vector<8x1xf32>
    %89 = tpu.reciprocal %88 : vector<8x1xf32> -> vector<8x1xf32>
    %90 = vector.broadcast %89 : vector<8x1xf32> to vector<8x8xf32>
    %91 = arith.mulf %86, %90 : vector<8x8xf32>
    %cst_34 = arith.constant dense<0.000000e+00> : vector<8x8xf32>
    %92 = tpu.matmul %91, %79, %cst_34 {dimension_numbers = #tpu.dot_dimension_numbers<[1], [0], [0], [1], [0, 0, 1, 1], [], []>} : vector<8x8xf32>, vector<8x8xf32>, vector<8x8xf32> -> vector<8x8xf32>
    %c16 = arith.constant 16 : index
    %c0_35 = arith.constant 0 : index
    %93 = vector.load %arg3[%c16, %c0_35] : memref<32x32xf32, #tpu.memory_space<vmem>>, vector<8x32xf32>
    %cst_36 = arith.constant dense<0.000000e+00> : vector<8x32xf32>
    %94 = tpu.matmul %92, %93, %cst_36 {dimension_numbers = #tpu.dot_dimension_numbers<[1], [0], [0], [1], [0, 0, 1, 1], [], []>} : vector<8x8xf32>, vector<8x32xf32>, vector<8x32xf32> -> vector<8x32xf32>
    %95 = arith.addf %76, %94 : vector<8x32xf32>
    %96 = vector.extract_strided_slice %37 {offsets = [0, 24], sizes = [8, 8], strides = [1, 1]} : vector<16x32xf32> to vector<8x8xf32>
    %97 = vector.extract_strided_slice %38 {offsets = [0, 24], sizes = [8, 8], strides = [1, 1]} : vector<16x32xf32> to vector<8x8xf32>
    %98 = vector.extract_strided_slice %39 {offsets = [0, 24], sizes = [8, 8], strides = [1, 1]} : vector<16x32xf32> to vector<8x8xf32>
    %99 = tpu.transpose %97, [1, 0] : vector<8x8xf32> -> vector<8x8xf32>
    %cst_37 = arith.constant dense<0.000000e+00> : vector<8x8xf32>
    %100 = tpu.matmul %96, %99, %cst_37 {dimension_numbers = #tpu.dot_dimension_numbers<[1], [0], [0], [1], [0, 0, 1, 1], [], []>} : vector<8x8xf32>, vector<8x8xf32>, vector<8x8xf32> -> vector<8x8xf32>
    %cst_38 = arith.constant dense<0xFF800000> : vector<8xf32>
    %101 = vector.multi_reduction <maximumf>, %100, %cst_38 [1] : vector<8x8xf32> to vector<8xf32>
    %102 = vector.shape_cast %101 : vector<8xf32> to vector<8x1xf32>
    %103 = vector.broadcast %102 : vector<8x1xf32> to vector<8x8xf32>
    %104 = arith.subf %100, %103 : vector<8x8xf32>
    %105 = math.exp %104 : vector<8x8xf32>
    %cst_39 = arith.constant dense<0.000000e+00> : vector<8xf32>
    %106 = vector.multi_reduction <add>, %105, %cst_39 [1] : vector<8x8xf32> to vector<8xf32>
    %107 = vector.shape_cast %106 : vector<8xf32> to vector<8x1xf32>
    %108 = tpu.reciprocal %107 : vector<8x1xf32> -> vector<8x1xf32>
    %109 = vector.broadcast %108 : vector<8x1xf32> to vector<8x8xf32>
    %110 = arith.mulf %105, %109 : vector<8x8xf32>
    %cst_40 = arith.constant dense<0.000000e+00> : vector<8x8xf32>
    %111 = tpu.matmul %110, %98, %cst_40 {dimension_numbers = #tpu.dot_dimension_numbers<[1], [0], [0], [1], [0, 0, 1, 1], [], []>} : vector<8x8xf32>, vector<8x8xf32>, vector<8x8xf32> -> vector<8x8xf32>
    %c24 = arith.constant 24 : index
    %c0_41 = arith.constant 0 : index
    %112 = vector.load %arg3[%c24, %c0_41] : memref<32x32xf32, #tpu.memory_space<vmem>>, vector<8x32xf32>
    %cst_42 = arith.constant dense<0.000000e+00> : vector<8x32xf32>
    %113 = tpu.matmul %111, %112, %cst_42 {dimension_numbers = #tpu.dot_dimension_numbers<[1], [0], [0], [1], [0, 0, 1, 1], [], []>} : vector<8x8xf32>, vector<8x32xf32>, vector<8x32xf32> -> vector<8x32xf32>
    %114 = arith.addf %95, %113 : vector<8x32xf32>
    %115 = vector.extract_strided_slice %37 {offsets = [8, 0], sizes = [8, 8], strides = [1, 1]} : vector<16x32xf32> to vector<8x8xf32>
    %116 = vector.extract_strided_slice %38 {offsets = [8, 0], sizes = [8, 8], strides = [1, 1]} : vector<16x32xf32> to vector<8x8xf32>
    %117 = vector.extract_strided_slice %39 {offsets = [8, 0], sizes = [8, 8], strides = [1, 1]} : vector<16x32xf32> to vector<8x8xf32>
    %118 = tpu.transpose %116, [1, 0] : vector<8x8xf32> -> vector<8x8xf32>
    %cst_43 = arith.constant dense<0.000000e+00> : vector<8x8xf32>
    %119 = tpu.matmul %115, %118, %cst_43 {dimension_numbers = #tpu.dot_dimension_numbers<[1], [0], [0], [1], [0, 0, 1, 1], [], []>} : vector<8x8xf32>, vector<8x8xf32>, vector<8x8xf32> -> vector<8x8xf32>
    %cst_44 = arith.constant dense<0xFF800000> : vector<8xf32>
    %120 = vector.multi_reduction <maximumf>, %119, %cst_44 [1] : vector<8x8xf32> to vector<8xf32>
    %121 = vector.shape_cast %120 : vector<8xf32> to vector<8x1xf32>
    %122 = vector.broadcast %121 : vector<8x1xf32> to vector<8x8xf32>
    %123 = arith.subf %119, %122 : vector<8x8xf32>
    %124 = math.exp %123 : vector<8x8xf32>
    %cst_45 = arith.constant dense<0.000000e+00> : vector<8xf32>
    %125 = vector.multi_reduction <add>, %124, %cst_45 [1] : vector<8x8xf32> to vector<8xf32>
    %126 = vector.shape_cast %125 : vector<8xf32> to vector<8x1xf32>
    %127 = tpu.reciprocal %126 : vector<8x1xf32> -> vector<8x1xf32>
    %128 = vector.broadcast %127 : vector<8x1xf32> to vector<8x8xf32>
    %129 = arith.mulf %124, %128 : vector<8x8xf32>
    %cst_46 = arith.constant dense<0.000000e+00> : vector<8x8xf32>
    %130 = tpu.matmul %129, %117, %cst_46 {dimension_numbers = #tpu.dot_dimension_numbers<[1], [0], [0], [1], [0, 0, 1, 1], [], []>} : vector<8x8xf32>, vector<8x8xf32>, vector<8x8xf32> -> vector<8x8xf32>
    %c0_47 = arith.constant 0 : index
    %c0_48 = arith.constant 0 : index
    %131 = vector.load %arg3[%c0_47, %c0_48] : memref<32x32xf32, #tpu.memory_space<vmem>>, vector<8x32xf32>
    %cst_49 = arith.constant dense<0.000000e+00> : vector<8x32xf32>
    %132 = tpu.matmul %130, %131, %cst_49 {dimension_numbers = #tpu.dot_dimension_numbers<[1], [0], [0], [1], [0, 0, 1, 1], [], []>} : vector<8x8xf32>, vector<8x32xf32>, vector<8x32xf32> -> vector<8x32xf32>
    %133 = vector.extract_strided_slice %37 {offsets = [8, 8], sizes = [8, 8], strides = [1, 1]} : vector<16x32xf32> to vector<8x8xf32>
    %134 = vector.extract_strided_slice %38 {offsets = [8, 8], sizes = [8, 8], strides = [1, 1]} : vector<16x32xf32> to vector<8x8xf32>
    %135 = vector.extract_strided_slice %39 {offsets = [8, 8], sizes = [8, 8], strides = [1, 1]} : vector<16x32xf32> to vector<8x8xf32>
    %136 = tpu.transpose %134, [1, 0] : vector<8x8xf32> -> vector<8x8xf32>
    %cst_50 = arith.constant dense<0.000000e+00> : vector<8x8xf32>
    %137 = tpu.matmul %133, %136, %cst_50 {dimension_numbers = #tpu.dot_dimension_numbers<[1], [0], [0], [1], [0, 0, 1, 1], [], []>} : vector<8x8xf32>, vector<8x8xf32>, vector<8x8xf32> -> vector<8x8xf32>
    %cst_51 = arith.constant dense<0xFF800000> : vector<8xf32>
    %138 = vector.multi_reduction <maximumf>, %137, %cst_51 [1] : vector<8x8xf32> to vector<8xf32>
    %139 = vector.shape_cast %138 : vector<8xf32> to vector<8x1xf32>
    %140 = vector.broadcast %139 : vector<8x1xf32> to vector<8x8xf32>
    %141 = arith.subf %137, %140 : vector<8x8xf32>
    %142 = math.exp %141 : vector<8x8xf32>
    %cst_52 = arith.constant dense<0.000000e+00> : vector<8xf32>
    %143 = vector.multi_reduction <add>, %142, %cst_52 [1] : vector<8x8xf32> to vector<8xf32>
    %144 = vector.shape_cast %143 : vector<8xf32> to vector<8x1xf32>
    %145 = tpu.reciprocal %144 : vector<8x1xf32> -> vector<8x1xf32>
    %146 = vector.broadcast %145 : vector<8x1xf32> to vector<8x8xf32>
    %147 = arith.mulf %142, %146 : vector<8x8xf32>
    %cst_53 = arith.constant dense<0.000000e+00> : vector<8x8xf32>
    %148 = tpu.matmul %147, %135, %cst_53 {dimension_numbers = #tpu.dot_dimension_numbers<[1], [0], [0], [1], [0, 0, 1, 1], [], []>} : vector<8x8xf32>, vector<8x8xf32>, vector<8x8xf32> -> vector<8x8xf32>
    %c8_54 = arith.constant 8 : index
    %c0_55 = arith.constant 0 : index
    %149 = vector.load %arg3[%c8_54, %c0_55] : memref<32x32xf32, #tpu.memory_space<vmem>>, vector<8x32xf32>
    %cst_56 = arith.constant dense<0.000000e+00> : vector<8x32xf32>
    %150 = tpu.matmul %148, %149, %cst_56 {dimension_numbers = #tpu.dot_dimension_numbers<[1], [0], [0], [1], [0, 0, 1, 1], [], []>} : vector<8x8xf32>, vector<8x32xf32>, vector<8x32xf32> -> vector<8x32xf32>
    %151 = arith.addf %132, %150 : vector<8x32xf32>
    %152 = vector.extract_strided_slice %37 {offsets = [8, 16], sizes = [8, 8], strides = [1, 1]} : vector<16x32xf32> to vector<8x8xf32>
    %153 = vector.extract_strided_slice %38 {offsets = [8, 16], sizes = [8, 8], strides = [1, 1]} : vector<16x32xf32> to vector<8x8xf32>
    %154 = vector.extract_strided_slice %39 {offsets = [8, 16], sizes = [8, 8], strides = [1, 1]} : vector<16x32xf32> to vector<8x8xf32>
    %155 = tpu.transpose %153, [1, 0] : vector<8x8xf32> -> vector<8x8xf32>
    %cst_57 = arith.constant dense<0.000000e+00> : vector<8x8xf32>
    %156 = tpu.matmul %152, %155, %cst_57 {dimension_numbers = #tpu.dot_dimension_numbers<[1], [0], [0], [1], [0, 0, 1, 1], [], []>} : vector<8x8xf32>, vector<8x8xf32>, vector<8x8xf32> -> vector<8x8xf32>
    %cst_58 = arith.constant dense<0xFF800000> : vector<8xf32>
    %157 = vector.multi_reduction <maximumf>, %156, %cst_58 [1] : vector<8x8xf32> to vector<8xf32>
    %158 = vector.shape_cast %157 : vector<8xf32> to vector<8x1xf32>
    %159 = vector.broadcast %158 : vector<8x1xf32> to vector<8x8xf32>
    %160 = arith.subf %156, %159 : vector<8x8xf32>
    %161 = math.exp %160 : vector<8x8xf32>
    %cst_59 = arith.constant dense<0.000000e+00> : vector<8xf32>
    %162 = vector.multi_reduction <add>, %161, %cst_59 [1] : vector<8x8xf32> to vector<8xf32>
    %163 = vector.shape_cast %162 : vector<8xf32> to vector<8x1xf32>
    %164 = tpu.reciprocal %163 : vector<8x1xf32> -> vector<8x1xf32>
    %165 = vector.broadcast %164 : vector<8x1xf32> to vector<8x8xf32>
    %166 = arith.mulf %161, %165 : vector<8x8xf32>
    %cst_60 = arith.constant dense<0.000000e+00> : vector<8x8xf32>
    %167 = tpu.matmul %166, %154, %cst_60 {dimension_numbers = #tpu.dot_dimension_numbers<[1], [0], [0], [1], [0, 0, 1, 1], [], []>} : vector<8x8xf32>, vector<8x8xf32>, vector<8x8xf32> -> vector<8x8xf32>
    %c16_61 = arith.constant 16 : index
    %c0_62 = arith.constant 0 : index
    %168 = vector.load %arg3[%c16_61, %c0_62] : memref<32x32xf32, #tpu.memory_space<vmem>>, vector<8x32xf32>
    %cst_63 = arith.constant dense<0.000000e+00> : vector<8x32xf32>
    %169 = tpu.matmul %167, %168, %cst_63 {dimension_numbers = #tpu.dot_dimension_numbers<[1], [0], [0], [1], [0, 0, 1, 1], [], []>} : vector<8x8xf32>, vector<8x32xf32>, vector<8x32xf32> -> vector<8x32xf32>
    %170 = arith.addf %151, %169 : vector<8x32xf32>
    %171 = vector.extract_strided_slice %37 {offsets = [8, 24], sizes = [8, 8], strides = [1, 1]} : vector<16x32xf32> to vector<8x8xf32>
    %172 = vector.extract_strided_slice %38 {offsets = [8, 24], sizes = [8, 8], strides = [1, 1]} : vector<16x32xf32> to vector<8x8xf32>
    %173 = vector.extract_strided_slice %39 {offsets = [8, 24], sizes = [8, 8], strides = [1, 1]} : vector<16x32xf32> to vector<8x8xf32>
    %174 = tpu.transpose %172, [1, 0] : vector<8x8xf32> -> vector<8x8xf32>
    %cst_64 = arith.constant dense<0.000000e+00> : vector<8x8xf32>
    %175 = tpu.matmul %171, %174, %cst_64 {dimension_numbers = #tpu.dot_dimension_numbers<[1], [0], [0], [1], [0, 0, 1, 1], [], []>} : vector<8x8xf32>, vector<8x8xf32>, vector<8x8xf32> -> vector<8x8xf32>
    %cst_65 = arith.constant dense<0xFF800000> : vector<8xf32>
    %176 = vector.multi_reduction <maximumf>, %175, %cst_65 [1] : vector<8x8xf32> to vector<8xf32>
    %177 = vector.shape_cast %176 : vector<8xf32> to vector<8x1xf32>
    %178 = vector.broadcast %177 : vector<8x1xf32> to vector<8x8xf32>
    %179 = arith.subf %175, %178 : vector<8x8xf32>
    %180 = math.exp %179 : vector<8x8xf32>
    %cst_66 = arith.constant dense<0.000000e+00> : vector<8xf32>
    %181 = vector.multi_reduction <add>, %180, %cst_66 [1] : vector<8x8xf32> to vector<8xf32>
    %182 = vector.shape_cast %181 : vector<8xf32> to vector<8x1xf32>
    %183 = tpu.reciprocal %182 : vector<8x1xf32> -> vector<8x1xf32>
    %184 = vector.broadcast %183 : vector<8x1xf32> to vector<8x8xf32>
    %185 = arith.mulf %180, %184 : vector<8x8xf32>
    %cst_67 = arith.constant dense<0.000000e+00> : vector<8x8xf32>
    %186 = tpu.matmul %185, %173, %cst_67 {dimension_numbers = #tpu.dot_dimension_numbers<[1], [0], [0], [1], [0, 0, 1, 1], [], []>} : vector<8x8xf32>, vector<8x8xf32>, vector<8x8xf32> -> vector<8x8xf32>
    %c24_68 = arith.constant 24 : index
    %c0_69 = arith.constant 0 : index
    %187 = vector.load %arg3[%c24_68, %c0_69] : memref<32x32xf32, #tpu.memory_space<vmem>>, vector<8x32xf32>
    %cst_70 = arith.constant dense<0.000000e+00> : vector<8x32xf32>
    %188 = tpu.matmul %186, %187, %cst_70 {dimension_numbers = #tpu.dot_dimension_numbers<[1], [0], [0], [1], [0, 0, 1, 1], [], []>} : vector<8x8xf32>, vector<8x32xf32>, vector<8x32xf32> -> vector<8x32xf32>
    %189 = arith.addf %170, %188 : vector<8x32xf32>
    %190 = tpu.concatenate %114, %189 in 0 : vector<8x32xf32>, vector<8x32xf32> -> vector<16x32xf32>
    %191 = vector.broadcast %6 : vector<1x32xf32> to vector<16x32xf32>
    %192 = arith.addf %190, %191 : vector<16x32xf32>
    %193 = arith.addf %0, %192 : vector<16x32xf32>
    %cst_71 = arith.constant dense<0.000000e+00> : vector<16xf32>
    %194 = vector.multi_reduction <add>, %193, %cst_71 [1] : vector<16x32xf32> to vector<16xf32>
    %195 = vector.shape_cast %194 : vector<16xf32> to vector<16x1xf32>
    %cst_72 = arith.constant 3.200000e+01 : f32
    %196 = vector.broadcast %cst_72 : f32 to vector<16x1xf32>
    %197 = arith.divf %195, %196 : vector<16x1xf32>
    %198 = vector.broadcast %197 : vector<16x1xf32> to vector<16x32xf32>
    %199 = arith.subf %193, %198 : vector<16x32xf32>
    %200 = arith.mulf %199, %199 : vector<16x32xf32>
    %cst_73 = arith.constant dense<0.000000e+00> : vector<16xf32>
    %201 = vector.multi_reduction <add>, %200, %cst_73 [1] : vector<16x32xf32> to vector<16xf32>
    %202 = vector.shape_cast %201 : vector<16xf32> to vector<16x1xf32>
    %cst_74 = arith.constant 3.200000e+01 : f32
    %203 = vector.broadcast %cst_74 : f32 to vector<16x1xf32>
    %204 = arith.divf %202, %203 : vector<16x1xf32>
    %205 = vector.broadcast %197 : vector<16x1xf32> to vector<16x32xf32>
    %206 = arith.subf %193, %205 : vector<16x32xf32>
    %cst_75 = arith.constant 9.99999974E-6 : f32
    %207 = vector.broadcast %cst_75 : f32 to vector<16x1xf32>
    %208 = arith.addf %204, %207 : vector<16x1xf32>
    %209 = math.rsqrt %208 : vector<16x1xf32>
    %210 = vector.broadcast %209 : vector<16x1xf32> to vector<16x32xf32>
    %211 = arith.mulf %206, %210 : vector<16x32xf32>
    %212 = vector.broadcast %3 : vector<1x32xf32> to vector<16x32xf32>
    %213 = arith.mulf %211, %212 : vector<16x32xf32>
    %214 = vector.broadcast %4 : vector<1x32xf32> to vector<16x32xf32>
    %215 = arith.addf %213, %214 : vector<16x32xf32>
    %c0_76 = arith.constant 0 : index
    %c0_77 = arith.constant 0 : index
    %216 = vector.load %arg4[%c0_76, %c0_77] : memref<32x128xf32, #tpu.memory_space<vmem>>, vector<32x128xf32>
    %cst_78 = arith.constant dense<0.000000e+00> : vector<16x128xf32>
    %217 = tpu.matmul %215, %216, %cst_78 {dimension_numbers = #tpu.dot_dimension_numbers<[1], [0], [0], [1], [0, 0, 1, 1], [], []>} : vector<16x32xf32>, vector<32x128xf32>, vector<16x128xf32> -> vector<16x128xf32>
    %218 = vector.broadcast %7 : vector<1x128xf32> to vector<16x128xf32>
    %219 = arith.addf %217, %218 : vector<16x128xf32>
    %cst_79 = arith.constant 1.702000e+00 : f32
    %220 = vector.broadcast %cst_79 : f32 to vector<16x128xf32>
    %221 = arith.mulf %220, %219 : vector<16x128xf32>
    %222 = arith.negf %221 : vector<16x128xf32>
    %223 = math.exp %222 : vector<16x128xf32>
    %cst_80 = arith.constant 1.000000e+00 : f32
    %224 = vector.broadcast %cst_80 : f32 to vector<16x128xf32>
    %225 = arith.addf %224, %223 : vector<16x128xf32>
    %226 = arith.divf %224, %225 : vector<16x128xf32>
    %227 = arith.mulf %219, %226 : vector<16x128xf32>
    %c0_81 = arith.constant 0 : index
    %c0_82 = arith.constant 0 : index
    %228 = vector.load %arg5[%c0_81, %c0_82] : memref<128x32xf32, #tpu.memory_space<vmem>>, vector<128x32xf32>
    %cst_83 = arith.constant dense<0.000000e+00> : vector<16x32xf32>
    %229 = tpu.matmul %227, %228, %cst_83 {dimension_numbers = #tpu.dot_dimension_numbers<[1], [0], [0], [1], [0, 0, 1, 1], [], []>} : vector<16x128xf32>, vector<128x32xf32>, vector<16x32xf32> -> vector<16x32xf32>
    %230 = vector.broadcast %8 : vector<1x32xf32> to vector<16x32xf32>
    %231 = arith.addf %229, %230 : vector<16x32xf32>
    %232 = arith.addf %193, %231 : vector<16x32xf32>
    %c0_84 = arith.constant 0 : index
    %c0_85 = arith.constant 0 : index
    %233 = vector.load %arg6[%c0_84, %c0_85] : memref<16x32xf32, #tpu.memory_space<vmem>>, vector<16x32xf32>
    tpu.vector_store %arg6[%c0_84, %c0_85], %232 {strides = array<i32>} : memref<16x32xf32, #tpu.memory_space<vmem>>, vector<16x32xf32>,
    return
  }
}

</mosaic_0001>

<bundles_post_ra>
// kernel: tpu_custom_call.1
= control target key start
LH: loop header
LB: loop body
LE: loop exit
PB: predicated region body
PF: predicated region fallthrough
CT: control target
= control target key end

     0   :  { %vm34_vm0 = vcmask 261120   ;;  %s3187_s0 = inlined_call_operand.vmem [shape: f32[16,32], index: 0, kind: input, shape index: {}]   ;;  %s3188_s1 = inlined_call_operand.vmem [shape: f32[8,128], index: 1, kind: input, shape index: {}]   ;;  %s3189_s2 = inlined_call_operand.vmem [shape: f32[32,96], index: 2, kind: input, shape index: {}]   ;;  %s3190_s3 = inlined_call_operand.vmem [shape: f32[32,32], index: 3, kind: input, shape index: {}]   ;;  %s3191_s4 = inlined_call_operand.vmem [shape: f32[32,128], index: 4, kind: input, shape index: {}]   ;;  %s3192_s5 = inlined_call_operand.vmem [shape: f32[128,32], index: 5, kind: input, shape index: {}]   ;;  %s3193_s6 = inlined_call_operand.hbm [shape: f32[16,32], index: 6, kind: output, shape index: {}]  }
   0x1   :  { %v2835_v0 = vld [vmem:[%s3187_s0] sm:$0xff]  ;;  %v2840_v1 = vld [vmem:[%s3187_s0 + $0x8] sm:$0xff] }
   0x2   :  { %11 = vsyncpa [#allocation3], 0  ;;  %v35_v2 = vsel %vm34_vm0, %v2835_v0, 0.0  ;;  %v38_v3 = vsel %vm34_vm0, %v2840_v1, 0.0  ;;  %v74_v14 = vld [vmem:[%s3189_s2] sm:$0xff]  ;;  %v75_v15 = vld [vmem:[%s3189_s2 + $0x8] sm:$0xff] }
   0x3   :  { %36 = vadd.xlane.f32.xlu0 %v35_v2  ;;  %v76_v16 = vld [vmem:[%s3189_s2 + $0x10] sm:$0xff]  ;;  %v2645_v17 = vpack.c.bf16 %v75_v15, %v74_v14  ;;  %v77_v18 = vld [vmem:[%s3189_s2 + $0x18] sm:$0xff]  ;;  %v2344_v27 = vld [vmem:[%s3188_s1] ss:$0 sm:$0xff]  ;;  %v2781_v36 = vmov 0.0   ;;  %vm2782_vm1 = vmmov 0  }
   0x4   :  { %v2649_v19 = vpack.c.bf16 %v77_v18, %v76_v16  ;;  %v2345_v29 = vld [vmem:[%s3188_s1 + $0x1] ss:$0 sm:$0xff]  ;;  %2504 = vmatprep.subr.mxu1 %v2781_v36  ;;  %2506 = vmatprep.mubr.msk.f32.mxu1 %vm2782_vm1, %v2781_v36  ;;  %v2346_v37 = vld [vmem:[%s3188_s1 + $0x4] ss:$0 sm:$0xff]  ;;  %s2783_s13 = smov 96   ;;  %s2784_s14 = smov 88  }
   0x5   :  { %2646 = vmatprep.subr.bf16.mxu0 %v2645_v17  ;;  %vm168_vm2 = vcmask 64512   ;;  %s2785_s15 = smov 64   ;;  %s2786_s16 = smov 120   ;;  %v2914_v58 = vld [vmem:[%s3190_s3] sm:$0xff] }
   0x6   :  { %2648 = vmatpush3.bf16.msra.mxu0 %v2645_v17  ;;  %2505 = vmatpush3.msra.mxu1 %v2914_v58  ;;  %s2787_s19 = smov 56   ;;  %s2788_s20 = smov 112  }
   0x7   :  { %39 = vadd.xlane.f32.xlu0 %v38_v3  ;;  %2650 = vmatprep.subr.bf16.mxu0 %v2649_v19  ;;  %s2789_s21 = smov 80   ;;  %s2790_s24 = smov 72  }
   0x8   :  { %2514 = vmatprep.subr.mxu1 %v2781_v36  ;;  %s2791_s0 = smov 104   ;;  %s2792_s25 = smov 48  }
   0x9   :  { %s2793_s28 = smov 40  }
   0xa   :  { %2652 = vmatpush3.bf16.msra.mxu0 %v2649_v19 }
   0xb   :  { %2479 = vmatprep.subr.mxu0 %v2781_v36 }
  0x90   :  { %v37_v4 = vpop.xlane.xlu0 %36 }
  0x91   :  { %v42_v5 = vmul.f32 0.03125, %v37_v4 }
  0x93   :  { %v44_v6 = vsub.f32 %v2835_v0, %v42_v5 }
  0x94   :  { %v40_v7 = vpop.xlane.xlu0 %39 }
  0x95   :  { %v43_v8 = vmul.f32 0.03125, %v40_v7  ;;  %v46_v9 = vmul.f32 %v44_v6, %v44_v6 }
  0x97   :  { %v45_v10 = vsub.f32 %v2840_v1, %v43_v8  ;;  %v48_v11 = vsel %vm34_vm0, %v46_v9, 0.0 }
  0x98   :  { %49 = vadd.xlane.f32.xlu1 %v48_v11 }
  0x99   :  { %v47_v12 = vmul.f32 %v45_v10, %v45_v10 }
  0x9b   :  { %v51_v13 = vsel %vm34_vm0, %v47_v12, 0.0 }
  0x9c   :  { %52 = vadd.xlane.f32.xlu1 %v51_v13  ;;  %v2933_v13 = vld [vmem:[%s3190_s3 + $0x8] sm:$0xff] }
 0x125   :  { %v50_v20 = vpop.xlane.xlu1 %49 }
 0x126   :  { %v54_v21 = vmul.f32 0.03125, %v50_v20 }
 0x128   :  { %v56_v22 = vadd.f32 1e-05, %v54_v21 }
 0x129   :  { %v53_v23 = vpop.xlane.xlu1 %52 }
 0x12a   :  { %2709 = vrsqrt.f32 %v56_v22  ;;  %v55_v24 = vmul.f32 0.03125, %v53_v23 }
 0x12c   :  { %v57_v25 = vadd.f32 1e-05, %v55_v24 }
 0x12e   :  { %2711 = vrsqrt.f32 %v57_v25 }
 0x134   :  { %v2710_v26 = vpop.eup %2709 }
 0x135   :  { %v60_v28 = vmul.f32 %v2710_v26, %v44_v6 }
 0x137   :  { %v66_v30 = vmul.f32 %v2344_v27, %v60_v28 }
 0x138   :  { %v2712_v31 = vpop.eup %2711 }
 0x139   :  { %v61_v32 = vmul.f32 %v2712_v31, %v45_v10  ;;  %v72_v33 = vadd.f32 %v2345_v29, %v66_v30 }
 0x13b   :  { %v67_v34 = vmul.f32 %v2344_v27, %v61_v32  ;;  %2476 = vmatprep.mubr.msk.f32.mxu0 %vm34_vm0, %v72_v33 }
 0x13d   :  { %v73_v35 = vadd.f32 %v2345_v29, %v67_v34 }
 0x13f   :  { %2477 = vmatmul.mubr.msk.f32.vlgmr.msra.gmra.mrb[0].mxu0 %vm34_vm0, %v73_v35  ;;  %v2970_v35 = vld [vmem:[%s3190_s3 + $0x10] sm:$0xff] }
 0x140   :  { %2481 = vmatprep.mubr.msk.f32.mxu0 %vm2782_vm1, %v2781_v36 }
 0x212   :  { %v2478_v38 = vpop.f32.mrb[0].mxu0 }
 0x213   :  { %v2879_v39 = vadd.f32 %v2478_v38, %v2346_v37  ;;  %v154_v40 = vpop.f32.mrb[1].mxu0 }
 0x214   :  { %v2881_v41 = vadd.f32 %v2346_v37, %v154_v40 }
 0x216   :  { %166 = vrot.lane.b32.xlu0 %v2881_v41, %s2783_s13  ;;  %v2889_v43 = vmul.f32 0.35355338, %v2881_v41 }
 0x21a   :  { %334 = vrot.lane.b32.xlu0 %v2881_v41, %s2784_s14 }
 0x288   :  { %v167_v42 = vpop.permute.xlu0 %166 }
 0x289   :  { %2480 = vmatpush3.xpose.msk.msra.mxu0 %vm168_vm2, %v167_v42 }
 0x28a   :  { %2484 = vmatprep.subr.mxu0 %v2781_v36 }
 0x28c   :  { %2482 = vmatmul.mubr.msk.f32.vlgmr.msra.gmra.mrb[2].mxu0 %vm168_vm2, %v2889_v43  ;;  %v335_v56 = vpop.permute.xlu0 %334 }
 0x28d   :  { %2486 = vmatprep.mubr.msk.f32.mxu0 %vm2782_vm1, %v2781_v36 }
 0x35f   :  { %v240_v44 = vpop.f32.mrb[2].mxu0 }
 0x360   :  { %v2483_v45 = vpop.f32.mrb[3].mxu0  ;;  %v244_v46 = vsel %vm168_vm2, %v240_v44, -inf }
 0x361   :  { %245 = vmax.xlane.f32.xlu1 %v244_v46 }
 0x372   :  { %255 = vrot.lane.b32.xlu1 %v2881_v41, %s2785_s15 }
 0x3ee   :  { %v246_v47 = vpop.xlane.xlu1 %245 }
 0x3ef   :  { %v247_v48 = vsub.f32 %v240_v44, %v246_v47 }
 0x3f1   :  { %v248_v49 = vmul.f32 1.442695, %v247_v48 }
 0x3f2   :  { %v256_v50 = vpop.permute.xlu1 %255 }
 0x3f3   :  { %2713 = vpow2.f32 %v248_v49  ;;  %2485 = vmatpush3.msra.mxu0 %v256_v50  ;;  %v2985_v50 = vmul.f32 0.35355338, %v2879_v39 }
 0x3f4   :  { %2489 = vmatprep.subr.mxu0 %v2781_v36 }
 0x3fd   :  { %v2714_v51 = vpop.eup %2713 }
 0x3fe   :  { %v250_v52 = vsel %vm168_vm2, %v2714_v51, 0.0 }
 0x3ff   :  { %251 = vadd.xlane.f32.xlu1 %v250_v52 }
 0x410   :  { %332 = vrot.lane.b32.xlu1 %v2889_v43, %s2786_s16 }
 0x48c   :  { %v252_v53 = vpop.xlane.xlu1 %251 }
 0x48d   :  { %2715 = vrcp.f32 %v252_v53 }
 0x490   :  { %v333_v57 = vpop.permute.xlu1 %332 }
 0x497   :  { %v2716_v54 = vpop.eup %2715 }
 0x498   :  { %v254_v55 = vmul.f32 %v2716_v54, %v2714_v51 }
 0x49a   :  { %2487 = vmatmul.mubr.msk.f32.vlgmr.msra.gmra.mrb[4].mxu0 %vm168_vm2, %v254_v55 }
 0x49b   :  { %2490 = vmatpush3.xpose.msk.msra.mxu0 %vm168_vm2, %v335_v56  ;;  %2491 = vmatprep.mubr.msk.f32.mxu0 %vm2782_vm1, %v2781_v36 }
 0x49c   :  { %2494 = vmatprep.subr.mxu0 %v2781_v36 }
 0x49e   :  { %2492 = vmatmul.mubr.msk.f32.vlgmr.msra.gmra.mrb[6].mxu0 %vm168_vm2, %v333_v57 }
 0x49f   :  { %2496 = vmatprep.mubr.msk.f32.mxu0 %vm2782_vm1, %v2781_v36 }
 0x56d   :  { %v327_v59 = vpop.f32.mrb[4].mxu0 }
 0x56e   :  { %v2488_v60 = vpop.f32.mrb[5].mxu0  ;;  %2507 = vmatmul.mubr.msk.f32.vlgmr.msra.gmra.mrb[0].mxu1 %vm168_vm2, %v327_v59 }
 0x56f   :  { %2516 = vmatprep.mubr.msk.f32.mxu1 %vm2782_vm1, %v2781_v36  ;;  %v3008_v60 = vld [vmem:[%s3190_s3 + $0x18] sm:$0xff] }
 0x571   :  { %v406_v61 = vpop.f32.mrb[6].mxu0 }
 0x572   :  { %v2493_v62 = vpop.f32.mrb[7].mxu0  ;;  %v410_v63 = vsel %vm168_vm2, %v406_v61, -inf }
 0x573   :  { %411 = vmax.xlane.f32.xlu0 %v410_v63 }
 0x589   :  { %421 = vrot.lane.b32.xlu0 %v2881_v41, %s2787_s19 }
 0x58d   :  { %644 = vrot.lane.b32.xlu0 %v2889_v43, %s2788_s20 }
 0x600   :  { %v412_v2 = vpop.xlane.xlu0 %411 }
 0x601   :  { %v413_v3 = vsub.f32 %v406_v61, %v412_v2 }
 0x603   :  { %v414_v4 = vmul.f32 1.442695, %v413_v3 }
 0x604   :  { %v422_v5 = vpop.permute.xlu0 %421 }
 0x605   :  { %2717 = vpow2.f32 %v414_v4  ;;  %2495 = vmatpush3.msra.mxu0 %v422_v5 }
 0x606   :  { %2499 = vmatprep.subr.mxu0 %v2781_v36 }
 0x608   :  { %v645_v17 = vpop.permute.xlu0 %644 }
 0x60f   :  { %v2718_v6 = vpop.eup %2717 }
 0x610   :  { %v416_v7 = vsel %vm168_vm2, %v2718_v6, 0.0 }
 0x611   :  { %417 = vadd.xlane.f32.xlu1 %v416_v7 }
 0x622   :  { %646 = vrot.lane.b32.xlu1 %v2881_v41, %s2789_s21 }
 0x641   :  { %v640_v8 = vpop.f32.mrb[0].mxu1 }
 0x642   :  { %v2508_v9 = vpop.f32.mrb[1].mxu1 }
 0x69e   :  { %v418_v10 = vpop.xlane.xlu1 %417 }
 0x69f   :  { %2719 = vrcp.f32 %v418_v10 }
 0x6a2   :  { %v647_v15 = vpop.permute.xlu1 %646 }
 0x6a9   :  { %v2720_v11 = vpop.eup %2719 }
 0x6aa   :  { %v420_v12 = vmul.f32 %v2720_v11, %v2718_v6 }
 0x6ac   :  { %2497 = vmatmul.mubr.msk.f32.vlgmr.msra.gmra.mrb[8].mxu0 %vm168_vm2, %v420_v12 }
 0x6ad   :  { %2500 = vmatpush3.msra.mxu0 %v2933_v13  ;;  %2501 = vmatprep.mubr.msk.f32.mxu0 %vm2782_vm1, %v2781_v36 }
 0x6ae   :  { %2509 = vmatprep.subr.mxu0 %v2781_v36 }
 0x77f   :  { %v493_v14 = vpop.f32.mrb[8].mxu0 }
 0x780   :  { %v2498_v16 = vpop.f32.mrb[9].mxu0  ;;  %2502 = vmatmul.mubr.msk.f32.vlgmr.msra.gmra.mrb[10].mxu0 %vm168_vm2, %v493_v14 }
 0x781   :  { %2510 = vmatpush3.xpose.msk.msra.mxu0 %vm168_vm2, %v647_v15  ;;  %2511 = vmatprep.mubr.msk.f32.mxu0 %vm2782_vm1, %v2781_v36 }
 0x782   :  { %2519 = vmatprep.subr.mxu0 %v2781_v36 }
 0x784   :  { %2512 = vmatmul.mubr.msk.f32.vlgmr.msra.gmra.mrb[12].mxu0 %vm168_vm2, %v645_v17 }
 0x785   :  { %2521 = vmatprep.mubr.msk.f32.mxu0 %vm2782_vm1, %v2781_v36  ;;  %2520 = vmatpush3.msra.mxu0 %v2970_v35 }
 0x786   :  { %2529 = vmatprep.subr.mxu0 %v2781_v36 }
 0x853   :  { %v567_v18 = vpop.f32.mrb[10].mxu0 }
 0x854   :  { %v641_v19 = vadd.f32 %v640_v8, %v567_v18  ;;  %v2503_v20 = vpop.f32.mrb[11].mxu0 }
 0x857   :  { %v718_v21 = vpop.f32.mrb[12].mxu0 }
 0x858   :  { %v2513_v22 = vpop.f32.mrb[13].mxu0  ;;  %v722_v23 = vsel %vm168_vm2, %v718_v21, -inf }
 0x859   :  { %723 = vmax.xlane.f32.xlu1 %v722_v23 }
 0x86a   :  { %886 = vrot.lane.b32.xlu1 %v2881_v41, %s2790_s24 }
 0x86e   :  { %884 = vrot.lane.b32.xlu1 %v2889_v43, %s2791_s0 }
 0x872   :  { %1125 = vrot.lane.b32.xlu1 %v2879_v39, %s2783_s13 }
 0x8e6   :  { %v724_v24 = vpop.xlane.xlu1 %723 }
 0x8e7   :  { %v725_v25 = vsub.f32 %v718_v21, %v724_v24 }
 0x8e9   :  { %v726_v26 = vmul.f32 1.442695, %v725_v25 }
 0x8ea   :  { %v887_v32 = vpop.permute.xlu1 %886 }
 0x8eb   :  { %2721 = vpow2.f32 %v726_v26 }
 0x8ee   :  { %v885_v34 = vpop.permute.xlu1 %884 }
 0x8f2   :  { %v1126_v53 = vpop.permute.xlu1 %1125 }
 0x8f5   :  { %v2722_v27 = vpop.eup %2721 }
 0x8f6   :  { %v728_v28 = vsel %vm168_vm2, %v2722_v27, 0.0 }
 0x8f7   :  { %729 = vadd.xlane.f32.xlu0 %v728_v28 }
 0x90d   :  { %733 = vrot.lane.b32.xlu0 %v2881_v41, %s2792_s25 }
 0x984   :  { %v730_v29 = vpop.xlane.xlu0 %729 }
 0x985   :  { %2723 = vrcp.f32 %v730_v29 }
 0x988   :  { %v734_v30 = vpop.permute.xlu0 %733 }
 0x989   :  { %2515 = vmatpush3.msra.mxu1 %v734_v30 }
 0x98a   :  { %2524 = vmatprep.subr.mxu1 %v2781_v36 }
 0x98f   :  { %v2724_v31 = vpop.eup %2723 }
 0x990   :  { %v732_v33 = vmul.f32 %v2724_v31, %v2722_v27 }
 0x992   :  { %2517 = vmatmul.mubr.msk.f32.vlgmr.msra.gmra.mrb[2].mxu1 %vm168_vm2, %v732_v33 }
 0x993   :  { %2525 = vmatpush3.xpose.msk.msra.mxu1 %vm168_vm2, %v887_v32  ;;  %2526 = vmatprep.mubr.msk.f32.mxu1 %vm2782_vm1, %v2781_v36 }
 0x994   :  { %2534 = vmatprep.subr.mxu1 %v2781_v36 }
 0x996   :  { %2527 = vmatmul.mubr.msk.f32.vlgmr.msra.gmra.mrb[4].mxu1 %vm168_vm2, %v885_v34 }
 0x997   :  { %2536 = vmatprep.mubr.msk.f32.mxu1 %vm2782_vm1, %v2781_v36  ;;  %2535 = vmatpush3.msra.mxu1 %v3008_v60 }
 0x998   :  { %2544 = vmatprep.subr.mxu1 %v2781_v36 }
 0xa65   :  { %v805_v37 = vpop.f32.mrb[2].mxu1 }
 0xa66   :  { %v2518_v38 = vpop.f32.mrb[3].mxu1  ;;  %2522 = vmatmul.mubr.msk.f32.vlgmr.msra.gmra.mrb[14].mxu0 %vm168_vm2, %v805_v37 }
 0xa67   :  { %2531 = vmatprep.mubr.msk.f32.mxu0 %vm2782_vm1, %v2781_v36 }
 0xa69   :  { %v958_v40 = vpop.f32.mrb[4].mxu1 }
 0xa6a   :  { %v2528_v42 = vpop.f32.mrb[5].mxu1  ;;  %v962_v43 = vsel %vm168_vm2, %v958_v40, -inf }
 0xa6b   :  { %963 = vmax.xlane.f32.xlu0 %v962_v43 }
 0xa81   :  { %973 = vrot.lane.b32.xlu0 %v2881_v41, %s2793_s28 }
 0xa85   :  { %1291 = vrot.lane.b32.xlu0 %v2879_v39, %s2784_s14 }
 0xaf8   :  { %v964_v44 = vpop.xlane.xlu0 %963 }
 0xaf9   :  { %v965_v45 = vsub.f32 %v958_v40, %v964_v44 }
 0xafb   :  { %v966_v46 = vmul.f32 1.442695, %v965_v45 }
 0xafc   :  { %v974_v47 = vpop.permute.xlu0 %973 }
 0xafd   :  { %2725 = vpow2.f32 %v966_v46  ;;  %2530 = vmatpush3.msra.mxu0 %v974_v47 }
 0xafe   :  { %2539 = vmatprep.subr.mxu0 %v2781_v36 }
 0xb00   :  { %v1292_v57 = vpop.permute.xlu0 %1291 }
 0xb07   :  { %v2726_v48 = vpop.eup %2725 }
 0xb08   :  { %v968_v49 = vsel %vm168_vm2, %v2726_v48, 0.0 }
 0xb09   :  { %969 = vadd.xlane.f32.xlu1 %v968_v49 }
 0xb1a   :  { %1289 = vrot.lane.b32.xlu1 %v2985_v50, %s2786_s16 }
 0xb39   :  { %v879_v41 = vpop.f32.mrb[14].mxu0 }
 0xb3a   :  { %v883_v51 = vadd.f32 %v879_v41, %v641_v19  ;;  %v2523_v52 = vpop.f32.mrb[15].mxu0 }
 0xb96   :  { %v970_v54 = vpop.xlane.xlu1 %969 }
 0xb97   :  { %2727 = vrcp.f32 %v970_v54  ;;  %v2381_v54 = vld [vmem:[%s3188_s1 + $0x5] ss:$0 sm:$0xff] }
 0xb9a   :  { %v1290_v59 = vpop.permute.xlu1 %1289 }
 0xba1   :  { %v2728_v55 = vpop.eup %2727 }
 0xba2   :  { %v972_v56 = vmul.f32 %v2728_v55, %v2726_v48 }
 0xba4   :  { %2532 = vmatmul.mubr.msk.f32.vlgmr.msra.gmra.mrb[16].mxu0 %vm168_vm2, %v972_v56 }
 0xba5   :  { %2540 = vmatpush3.xpose.msk.msra.mxu0 %vm168_vm2, %v1126_v53  ;;  %2541 = vmatprep.mubr.msk.f32.mxu0 %vm2782_vm1, %v2781_v36 }
 0xba6   :  { %2549 = vmatprep.subr.mxu0 %v2781_v36 }
 0xba8   :  { %2542 = vmatmul.mubr.msk.f32.vlgmr.msra.gmra.mrb[18].mxu0 %vm168_vm2, %v2985_v50 }
 0xba9   :  { %2550 = vmatpush3.xpose.msk.msra.mxu0 %vm168_vm2, %v1292_v57  ;;  %2551 = vmatprep.mubr.msk.f32.mxu0 %vm2782_vm1, %v2781_v36 }
 0xbaa   :  { %2559 = vmatprep.subr.mxu0 %v2781_v36 }
 0xbac   :  { %2552 = vmatmul.mubr.msk.f32.vlgmr.msra.gmra.mrb[20].mxu0 %vm168_vm2, %v1290_v59 }
 0xbad   :  { %2560 = vmatpush3.msra.mxu0 %v2933_v13  ;;  %2561 = vmatprep.mubr.msk.f32.mxu0 %vm2782_vm1, %v2781_v36 }
 0xbae   :  { %2569 = vmatprep.subr.mxu0 %v2781_v36 }
 0xc77   :  { %v1045_v61 = vpop.f32.mrb[16].mxu0 }
 0xc78   :  { %v2533_v62 = vpop.f32.mrb[17].mxu0  ;;  %2537 = vmatmul.mubr.msk.f32.vlgmr.msra.gmra.mrb[6].mxu1 %vm168_vm2, %v1045_v61 }
 0xc79   :  { %2546 = vmatprep.mubr.msk.f32.mxu1 %vm2782_vm1, %v2781_v36 }
 0xc7b   :  { %v1198_v63 = vpop.f32.mrb[18].mxu0 }
 0xc7c   :  { %v2543_v2 = vpop.f32.mrb[19].mxu0  ;;  %v1202_v3 = vsel %vm168_vm2, %v1198_v63, -inf }
 0xc7d   :  { %1203 = vmax.xlane.f32.xlu0 %v1202_v3 }
 0xc7f   :  { %v1363_v4 = vpop.f32.mrb[20].mxu0 }
 0xc80   :  { %v2553_v5 = vpop.f32.mrb[21].mxu0  ;;  %v1367_v6 = vsel %vm168_vm2, %v1363_v4, -inf }
 0xc81   :  { %1368 = vmax.xlane.f32.xlu1 %v1367_v6 }
 0xc92   :  { %1378 = vrot.lane.b32.xlu1 %v2879_v39, %s2787_s19 }
 0xc96   :  { %1602 = vrot.lane.b32.xlu1 %v2879_v39, %s2789_s21 }
 0xc9a   :  { %1600 = vrot.lane.b32.xlu1 %v2985_v50, %s2788_s20 }
 0xd0a   :  { %v1204_v7 = vpop.xlane.xlu0 %1203 }
 0xd0b   :  { %v1205_v8 = vsub.f32 %v1198_v63, %v1204_v7 }
 0xd0d   :  { %v1206_v9 = vmul.f32 1.442695, %v1205_v8 }
 0xd0e   :  { %v1369_v10 = vpop.xlane.xlu1 %1368 }
 0xd0f   :  { %2729 = vpow2.f32 %v1206_v9  ;;  %v1370_v11 = vsub.f32 %v1363_v4, %v1369_v10 }
 0xd11   :  { %v1371_v12 = vmul.f32 1.442695, %v1370_v11 }
 0xd12   :  { %v1379_v25 = vpop.permute.xlu1 %1378 }
 0xd13   :  { %2731 = vpow2.f32 %v1371_v12 }
 0xd16   :  { %v1603_v30 = vpop.permute.xlu1 %1602 }
 0xd19   :  { %v2730_v13 = vpop.eup %2729 }
 0xd1a   :  { %v1208_v14 = vsel %vm168_vm2, %v2730_v13, 0.0 }
 0xd1b   :  { %1209 = vadd.xlane.f32.xlu0 %v1208_v14 }
 0xd1d   :  { %v2732_v15 = vpop.eup %2731 }
 0xd1e   :  { %v1373_v16 = vsel %vm168_vm2, %v2732_v15, 0.0 }
 0xd1f   :  { %1374 = vadd.xlane.f32.xlu0 %v1373_v16 }
 0xd35   :  { %1213 = vrot.lane.b32.xlu0 %v2879_v39, %s2785_s15 }
 0xd4b   :  { %v1119_v17 = vpop.f32.mrb[6].mxu1 }
 0xd4c   :  { %v3027_v18 = vadd.f32 %v1119_v17, %v883_v51  ;;  %v2538_v19 = vpop.f32.mrb[7].mxu1 }
 0xd4e   :  { %v2082_v56 = vadd.f32 %v2381_v54, %v3027_v18 }
 0xd50   :  { %v3078_v61 = vadd.f32 %v2082_v56, %v2835_v0 }
 0xd52   :  { %v2086_v63 = vsel %vm34_vm0, %v3078_v61, 0.0 }
 0xda8   :  { %v1210_v20 = vpop.xlane.xlu0 %1209 }
 0xda9   :  { %2733 = vrcp.f32 %v1210_v20 }
 0xdac   :  { %v1375_v21 = vpop.xlane.xlu0 %1374 }
 0xdad   :  { %2735 = vrcp.f32 %v1375_v21 }
 0xdb0   :  { %v1214_v22 = vpop.permute.xlu0 %1213 }
 0xdb1   :  { %2545 = vmatpush3.msra.mxu1 %v1214_v22 }
 0xdb2   :  { %2554 = vmatprep.subr.mxu1 %v2781_v36 }
 0xdb3   :  { %v2734_v23 = vpop.eup %2733 }
 0xdb4   :  { %v1212_v24 = vmul.f32 %v2734_v23, %v2730_v13 }
 0xdb6   :  { %2547 = vmatmul.mubr.msk.f32.vlgmr.msra.gmra.mrb[8].mxu1 %vm168_vm2, %v1212_v24 }
 0xdb7   :  { %v2736_v26 = vpop.eup %2735  ;;  %2555 = vmatpush3.msra.mxu1 %v1379_v25  ;;  %2556 = vmatprep.mubr.msk.f32.mxu1 %vm2782_vm1, %v2781_v36 }
 0xdb8   :  { %v1377_v27 = vmul.f32 %v2736_v26, %v2732_v15  ;;  %2564 = vmatprep.subr.mxu1 %v2781_v36 }
 0xdba   :  { %2557 = vmatmul.mubr.msk.f32.vlgmr.msra.gmra.mrb[10].mxu1 %vm168_vm2, %v1377_v27 }
 0xdbb   :  { %2565 = vmatpush3.msra.mxu1 %v2914_v58  ;;  %2566 = vmatprep.mubr.msk.f32.mxu1 %vm2782_vm1, %v2781_v36  ;;  %v1601_v58 = vpop.permute.xlu1 %1600 }
 0xdbc   :  { %2574 = vmatprep.subr.mxu1 %v2781_v36 }
 0xe89   :  { %v1285_v28 = vpop.f32.mrb[8].mxu1 }
 0xe8a   :  { %v2548_v29 = vpop.f32.mrb[9].mxu1  ;;  %2567 = vmatmul.mubr.msk.f32.vlgmr.msra.gmra.mrb[12].mxu1 %vm168_vm2, %v1285_v28 }
 0xe8b   :  { %2576 = vmatprep.mubr.msk.f32.mxu1 %vm2782_vm1, %v2781_v36 }
 0xe8d   :  { %v1450_v31 = vpop.f32.mrb[10].mxu1 }
 0xe8e   :  { %v2558_v32 = vpop.f32.mrb[11].mxu1  ;;  %2562 = vmatmul.mubr.msk.f32.vlgmr.msra.gmra.mrb[22].mxu0 %vm168_vm2, %v1450_v31 }
 0xe8f   :  { %2570 = vmatpush3.xpose.msk.msra.mxu0 %vm168_vm2, %v1603_v30  ;;  %2571 = vmatprep.mubr.msk.f32.mxu0 %vm2782_vm1, %v2781_v36  ;;  %v2382_v32 = vld [vmem:[%s3188_s1 + $0x2] ss:$0 sm:$0xff] }
 0xe90   :  { %2579 = vmatprep.subr.mxu0 %v2781_v36 }
 0xe92   :  { %2572 = vmatmul.mubr.msk.f32.vlgmr.msra.gmra.mrb[24].mxu0 %vm168_vm2, %v1601_v58 }
 0xe93   :  { %2580 = vmatpush3.msra.mxu0 %v2970_v35  ;;  %2581 = vmatprep.mubr.msk.f32.mxu0 %vm2782_vm1, %v2781_v36 }
 0xe94   :  { %2589 = vmatprep.subr.mxu0 %v2781_v36 }
 0xf5d   :  { %v1596_v33 = vpop.f32.mrb[12].mxu1 }
 0xf5e   :  { %v2568_v34 = vpop.f32.mrb[13].mxu1 }
 0xf61   :  { %v1523_v37 = vpop.f32.mrb[22].mxu0 }
 0xf62   :  { %v1597_v38 = vadd.f32 %v1596_v33, %v1523_v37  ;;  %v2563_v40 = vpop.f32.mrb[23].mxu0  ;;  %v2383_v33 = vld [vmem:[%s3188_s1 + $0x3] ss:$0 sm:$0xff] }
 0xf63   :  { %v2125_v40 = vld [vmem:[%s3191_s4 + $0x8] sm:$0xff] }
 0xf65   :  { %v1674_v42 = vpop.f32.mrb[24].mxu0 }
 0xf66   :  { %v2573_v43 = vpop.f32.mrb[25].mxu0  ;;  %v1678_v44 = vsel %vm168_vm2, %v1674_v42, -inf }
 0xf67   :  { %1679 = vmax.xlane.f32.xlu0 %v1678_v44  ;;  %v2126_v43 = vld [vmem:[%s3191_s4 + $0x10] sm:$0xff]  ;;  %v2127_v44 = vld [vmem:[%s3191_s4 + $0x18] sm:$0xff] }
 0xf7d   :  { %1689 = vrot.lane.b32.xlu0 %v2879_v39, %s2792_s25 }
 0xf81   :  { %1839 = vrot.lane.b32.xlu0 %v2985_v50, %s2791_s0  ;;  %s2794_s0 = smov [#allocation2]  }
 0xf82   :  { %s2333_s25 = sshll.u32 %s2794_s0, 4  ;;  %s2334_s25 = int_to_ptr.vmem [resolvable:$true] %s2333_s25 }
 0xf83   :  { %s2757_s26 = scalar_lea.vmem %s2334_s25, 256  ;;  %p2762_p1 = scmp.lt.s32.totalorder %s2334_s25, %s2334_s25 }
 0xf84   :  { %p2758_p0 = scmp.ne.s32.totalorder %s2334_s25, %s2757_s26  ;;  %p2763_p2 = scmp.lt.s32.totalorder %s2757_s26, %s2757_s26 }
 0xf86   :  { %p2764_p3 = por %p2763_p2, %p2762_p1 }
 0xf88   :  { %p2765_p4 = pnand %p2764_p3, %p2758_p0 }
 0xff4   :  { %v1680_v35 = vpop.xlane.xlu0 %1679 }
 0xff5   :  { %v1681_v45 = vsub.f32 %v1674_v42, %v1680_v35  ;;  %v2657_v35 = vpack.c.bf16 %v2127_v44, %v2126_v43 }
 0xff7   :  { %v1682_v46 = vmul.f32 1.442695, %v1681_v45 }
 0xff8   :  { %v1690_v47 = vpop.permute.xlu0 %1689 }
 0xff9   :  { %2737 = vpow2.f32 %v1682_v46  ;;  %2575 = vmatpush3.msra.mxu1 %v1690_v47 }
 0xffa   :  { %2584 = vmatprep.subr.mxu1 %v2781_v36 }
 0xffc   :  { %v1840_v53 = vpop.permute.xlu0 %1839 }
0x1003   :  { %v2738_v48 = vpop.eup %2737 }
0x1004   :  { %v1684_v49 = vsel %vm168_vm2, %v2738_v48, 0.0 }
0x1005   :  { %1685 = vadd.xlane.f32.xlu1 %v1684_v49 }
0x1016   :  { %1841 = vrot.lane.b32.xlu1 %v2879_v39, %s2790_s24 }
0x1092   :  { %v1686_v41 = vpop.xlane.xlu1 %1685 }
0x1093   :  { %2739 = vrcp.f32 %v1686_v41 }
0x1096   :  { %v1842_v50 = vpop.permute.xlu1 %1841 }
0x109d   :  { %v2740_v51 = vpop.eup %2739 }
0x109e   :  { %v1688_v52 = vmul.f32 %v2740_v51, %v2738_v48 }
0x10a0   :  { %2577 = vmatmul.mubr.msk.f32.vlgmr.msra.gmra.mrb[14].mxu1 %vm168_vm2, %v1688_v52  ;;  %v2229_v52 = vld [vmem:[%s3192_s5] sm:$0xff] }
0x10a1   :  { %2585 = vmatpush3.xpose.msk.msra.mxu1 %vm168_vm2, %v1842_v50  ;;  %2586 = vmatprep.mubr.msk.f32.mxu1 %vm2782_vm1, %v2781_v36  ;;  %v2230_v50 = vld [vmem:[%s3192_s5 + $0x8] sm:$0xff] }
0x10a2   :  { %2594 = vmatprep.subr.mxu1 %v2781_v36 }
0x10a4   :  { %2587 = vmatmul.mubr.msk.f32.vlgmr.msra.gmra.mrb[16].mxu1 %vm168_vm2, %v1840_v53  ;;  %v2661_v53 = vpack.c.bf16 %v2230_v50, %v2229_v52 }
0x10a5   :  { %2595 = vmatpush3.msra.mxu1 %v3008_v60  ;;  %2596 = vmatprep.mubr.msk.f32.mxu1 %vm2782_vm1, %v2781_v36 }
0x10a6   :  { %2662 = vmatprep.subr.bf16.mxu1 %v2661_v53 }
0x1173   :  { %v1761_v55 = vpop.f32.mrb[14].mxu1 }
0x1174   :  { %v2578_v57 = vpop.f32.mrb[15].mxu1  ;;  %2582 = vmatmul.mubr.msk.f32.vlgmr.msra.gmra.mrb[26].mxu0 %vm168_vm2, %v1761_v55  ;;  %v2232_v55 = vld [vmem:[%s3192_s5 + $0x18] sm:$0xff] }
0x1175   :  { %2591 = vmatprep.mubr.msk.f32.mxu0 %vm2782_vm1, %v2781_v36  ;;  %v2233_v57 = vld [vmem:[%s3192_s5 + $0x20] sm:$0xff] }
0x1177   :  { %v1913_v59 = vpop.f32.mrb[16].mxu1 }
0x1178   :  { %v2588_v60 = vpop.f32.mrb[17].mxu1  ;;  %v1917_v62 = vsel %vm168_vm2, %v1913_v59, -inf }
0x1179   :  { %1918 = vmax.xlane.f32.xlu1 %v1917_v62  ;;  %v2235_v62 = vld [vmem:[%s3192_s5 + $0x30] sm:$0xff] }
0x117d   :  { %2087 = vadd.xlane.f32.xlu1 %v2086_v63  ;;  %v2236_v63 = vld [vmem:[%s3192_s5 + $0x38] sm:$0xff] }
0x1206   :  { %v1919_v2 = vpop.xlane.xlu1 %1918 }
0x1207   :  { %v1920_v3 = vsub.f32 %v1913_v59, %v1919_v2  ;;  %v2234_v59 = vld [vmem:[%s3192_s5 + $0x28] sm:$0xff]  ;;  %v2673_v2 = vpack.c.bf16 %v2236_v63, %v2235_v62 }
0x1208   :  { %v2669_v60 = vpack.c.bf16 %v2234_v59, %v2233_v57 }
0x1209   :  { %v1921_v4 = vmul.f32 1.442695, %v1920_v3  ;;  %v2237_v3 = vld [vmem:[%s3192_s5 + $0x40] sm:$0xff] }
0x120a   :  { %v2088_v14 = vpop.xlane.xlu1 %2087 }
0x120b   :  { %2741 = vpow2.f32 %v1921_v4  ;;  %v2092_v15 = vmul.f32 0.03125, %v2088_v14  ;;  %v2238_v4 = vld [vmem:[%s3192_s5 + $0x48] sm:$0xff] }
0x120d   :  { %v2094_v18 = vsub.f32 %v3078_v61, %v2092_v15 }
0x120f   :  { %v2096_v22 = vmul.f32 %v2094_v18, %v2094_v18 }
0x1211   :  { %v2098_v23 = vsel %vm34_vm0, %v2096_v22, 0.0 }
0x1215   :  { %v2742_v5 = vpop.eup %2741 }
0x1216   :  { %v1923_v6 = vsel %vm168_vm2, %v2742_v5, 0.0 }
0x1217   :  { %1924 = vadd.xlane.f32.xlu0 %v1923_v6  ;;  %v2239_v6 = vld [vmem:[%s3192_s5 + $0x50] sm:$0xff] }
0x122d   :  { %1928 = vrot.lane.b32.xlu0 %v2879_v39, %s2793_s28 }
0x1247   :  { %v1834_v0 = vpop.f32.mrb[26].mxu0 }
0x1248   :  { %v1838_v36 = vadd.f32 %v1834_v0, %v1597_v38  ;;  %v2583_v7 = vpop.f32.mrb[27].mxu0  ;;  %v2124_v38 = vld [vmem:[%s3191_s4] sm:$0xff]  ;;  %v2240_v0 = vld [vmem:[%s3192_s5 + $0x58] sm:$0xff] }
0x1249   :  { %v2653_v42 = vpack.c.bf16 %v2125_v40, %v2124_v38  ;;  %v2241_v7 = vld [vmem:[%s3192_s5 + $0x60] sm:$0xff] }
0x12a4   :  { %v1925_v8 = vpop.xlane.xlu0 %1924 }
0x12a5   :  { %2743 = vrcp.f32 %v1925_v8  ;;  %v2242_v8 = vld [vmem:[%s3192_s5 + $0x68] sm:$0xff] }
0x12a8   :  { %v1929_v9 = vpop.permute.xlu0 %1928 }
0x12a9   :  { %2590 = vmatpush3.msra.mxu0 %v1929_v9  ;;  %v2685_v9 = vpack.c.bf16 %v2242_v8, %v2241_v7 }
0x12aa   :  { %2654 = vmatprep.subr.bf16.mxu0 %v2653_v42 }
0x12af   :  { %v2744_v10 = vpop.eup %2743 }
0x12b0   :  { %v1927_v11 = vmul.f32 %v2744_v10, %v2742_v5  ;;  %v2677_v5 = vpack.c.bf16 %v2238_v4, %v2237_v3  ;;  %v2243_v10 = vld [vmem:[%s3192_s5 + $0x70] sm:$0xff] }
0x12b2   :  { %2592 = vmatmul.mubr.msk.f32.vlgmr.msra.gmra.mrb[28].mxu0 %vm168_vm2, %v1927_v11  ;;  %v2244_v11 = vld [vmem:[%s3192_s5 + $0x78] sm:$0xff] }
0x12b3   :  { %2656 = vmatpush3.bf16.msra.mxu0 %v2653_v42 }
0x12b4   :  { %2658 = vmatprep.subr.bf16.mxu0 %v2657_v35 }
0x12b7   :  { %2660 = vmatpush3.bf16.msra.mxu0 %v2657_v35 }
0x1385   :  { %v2000_v12 = vpop.f32.mrb[28].mxu0 }
0x1386   :  { %v2593_v13 = vpop.f32.mrb[29].mxu0  ;;  %2597 = vmatmul.mubr.msk.f32.vlgmr.msra.gmra.mrb[18].mxu1 %vm168_vm2, %v2000_v12  ;;  %v2689_v12 = vpack.c.bf16 %v2244_v11, %v2243_v10 }
0x1387   :  { %2664 = vmatpush3.bf16.msra.mxu1 %v2661_v53  ;;  %v2384_v13 = vld [vmem:[%s3188_s1 + $0x6] ss:$0 sm:$0xff] }
0x1459   :  { %v2073_v16 = vpop.f32.mrb[18].mxu1 }
0x145a   :  { %v2077_v17 = vadd.f32 %v2073_v16, %v1838_v36  ;;  %v2598_v39 = vpop.f32.mrb[19].mxu1  ;;  %v2681_v36 = vpack.c.bf16 %v2240_v0, %v2239_v6 }
0x145c   :  { %v2083_v19 = vadd.f32 %v2381_v54, %v2077_v17  ;;  %v2231_v54 = vld [vmem:[%s3192_s5 + $0x10] sm:$0xff] }
0x145d   :  { %v2665_v56 = vpack.c.bf16 %v2232_v55, %v2231_v54 }
0x145e   :  { %v3090_v20 = vadd.f32 %v2083_v19, %v2840_v1 }
0x145f   :  { %2666 = vmatprep.subr.bf16.mxu1 %v2665_v56 }
0x1460   :  { %v2089_v21 = vsel %vm34_vm0, %v3090_v20, 0.0  ;;  %2668 = vmatpush3.bf16.msra.mxu1 %v2665_v56 }
0x1461   :  { %2090 = vadd.xlane.f32.xlu1 %v2089_v21  ;;  %2670 = vmatprep.subr.bf16.mxu1 %v2669_v60 }
0x1464   :  { %2672 = vmatpush3.bf16.msra.mxu1 %v2669_v60 }
0x1465   :  { %2099 = vadd.xlane.f32.xlu1 %v2098_v23  ;;  %2674 = vmatprep.subr.bf16.mxu1 %v2673_v2 }
0x1468   :  { %2676 = vmatpush3.bf16.msra.mxu1 %v2673_v2 }
0x1469   :  { %2678 = vmatprep.subr.bf16.mxu1 %v2677_v5 }
0x146c   :  { %2680 = vmatpush3.bf16.msra.mxu1 %v2677_v5 }
0x146d   :  { %2682 = vmatprep.subr.bf16.mxu1 %v2681_v36 }
0x1470   :  { %2684 = vmatpush3.bf16.msra.mxu1 %v2681_v36 }
0x1471   :  { %2686 = vmatprep.subr.bf16.mxu1 %v2685_v9 }
0x1474   :  { %2688 = vmatpush3.bf16.msra.mxu1 %v2685_v9 }
0x1475   :  { %2690 = vmatprep.subr.bf16.mxu1 %v2689_v12 }
0x1478   :  { %2692 = vmatpush3.bf16.msra.mxu1 %v2689_v12 }
0x14ee   :  { %v2091_v24 = vpop.xlane.xlu1 %2090 }
0x14ef   :  { %v2093_v25 = vmul.f32 0.03125, %v2091_v24 }
0x14f1   :  { %v2095_v26 = vsub.f32 %v3090_v20, %v2093_v25 }
0x14f2   :  { %v2100_v27 = vpop.xlane.xlu1 %2099 }
0x14f3   :  { %v2104_v28 = vmul.f32 0.03125, %v2100_v27  ;;  %v2097_v29 = vmul.f32 %v2095_v26, %v2095_v26 }
0x14f5   :  { %v2106_v30 = vadd.f32 1e-05, %v2104_v28  ;;  %v2101_v31 = vsel %vm34_vm0, %v2097_v29, 0.0 }
0x14f6   :  { %2102 = vadd.xlane.f32.xlu1 %v2101_v31 }
0x14f7   :  { %2745 = vrsqrt.f32 %v2106_v30  ;;  %v2389_v30 = vld [vmem:[%s3188_s1 + $0x7] ss:$0 sm:$0xff] }
0x1501   :  { %v2746_v1 = vpop.eup %2745 }
0x1502   :  { %v2110_v58 = vmul.f32 %v2746_v1, %v2094_v18 }
0x1504   :  { %v2116_v34 = vmul.f32 %v2382_v32, %v2110_v58 }
0x1506   :  { %v2122_v37 = vadd.f32 %v2383_v33, %v2116_v34 }
0x1508   :  { %2607 = vmatprep.mubr.msk.f32.mxu0 %vm34_vm0, %v2122_v37 }
0x1583   :  { %v2103_v45 = vpop.xlane.xlu1 %2102 }
0x1584   :  { %v2105_v46 = vmul.f32 0.03125, %v2103_v45 }
0x1586   :  { %v2107_v47 = vadd.f32 1e-05, %v2105_v46 }
0x1588   :  { %2747 = vrsqrt.f32 %v2107_v47 }
0x1592   :  { %v2748_v48 = vpop.eup %2747 }
0x1593   :  { %v2111_v49 = vmul.f32 %v2748_v48, %v2095_v26 }
0x1595   :  { %v2117_v41 = vmul.f32 %v2382_v32, %v2111_v49 }
0x1597   :  { %v2123_v51 = vadd.f32 %v2383_v33, %v2117_v41 }
0x1599   :  { %2608 = vmatmul.mubr.msk.f32.vlgmr.msra.gmra.mrb[30].mxu0 %vm34_vm0, %v2123_v51 }
0x166c   :  { %v2609_v14 = vpop.f32.mrb[30].mxu0 }
0x166d   :  { %v2210_v15 = vadd.f32 %v2609_v14, %v2384_v13  ;;  %v2204_v16 = vpop.f32.mrb[31].mxu0 }
0x166e   :  { %v2205_v17 = vadd.f32 %v2384_v13, %v2204_v16 }
0x166f   :  { %v2388_v39 = vmul.f32 -1.702, %v2210_v15 }
0x1670   :  { %v2387_v18 = vmul.f32 -1.702, %v2205_v17 }
0x1671   :  { %v2219_v19 = vmul.f32 1.442695, %v2388_v39 }
0x1672   :  { %v2217_v21 = vmul.f32 1.442695, %v2387_v18 }
0x1673   :  { %2749 = vpow2.f32 %v2219_v19 }
0x1674   :  { %2751 = vpow2.f32 %v2217_v21 }
0x167d   :  { %v2750_v22 = vpop.eup %2749 }
0x167e   :  { %v2752_v23 = vpop.eup %2751  ;;  %v2222_v24 = vadd.f32 1.0, %v2750_v22 }
0x167f   :  { %v2221_v25 = vadd.f32 1.0, %v2752_v23 }
0x1680   :  { %2753 = vrcp.f32 %v2222_v24 }
0x1681   :  { %2755 = vrcp.f32 %v2221_v25 }
0x168a   :  { %v2754_v26 = vpop.eup %2753 }
0x168b   :  { %v2756_v27 = vpop.eup %2755  ;;  %v2228_v29 = vmul.f32 %v2754_v26, %v2210_v15 }
0x168c   :  { %v2227_v28 = vmul.f32 %v2756_v27, %v2205_v17 }
0x168e   :  { %2642 = vmatprep.mubr.f32.mxu1 %v2227_v28 }
0x168f   :  { %2643 = vmatmul.mubr.f32.vlgmr.msra.gmra.mrb[20].mxu1 %v2228_v29 }
0x1762   :  { %v2644_v31 = vpop.f32.mrb[20].mxu1 }
0x1763   :  { %v2321_v1 = vadd.f32 %v2644_v31, %v2389_v30  ;;  %v2315_v32 = vpop.f32.mrb[21].mxu1 }
0x1764   :  { %v2316_v58 = vadd.f32 %v2389_v30, %v2315_v32 }
0x1765   :  { %v2325_v33 = vadd.f32 %v2321_v1, %v3090_v20 }
0x1766   :  { %v2324_v34 = vadd.f32 %v2316_v58, %v3078_v61 }
0x1767   :  { %2327 = vst.msk [vmem:[#allocation2 + $0x8] sm:$0xff] %vm34_vm0, %v2325_v33 }
0x1768   :  { %2326 = vst.msk [vmem:[#allocation2] sm:$0xff] %vm34_vm0, %v2324_v34 }
0x1769   :  { %2768 = shalt.err (!%p2765_p4)
}
0x176a   :  { %s2769_s28 = scalar_lea.hbm %s3193_s6, 256 }
0x176b   :  { %p2770_p5 = scmp.ne.s32.totalorder %s3193_s6, %s2769_s28  ;;  %p2773_p6 = scmp.lt.u32.totalorder %s2769_s28, %s3193_s6 }
0x176d   :  { %p2775_p7 = pnand %p2773_p6, %p2770_p5 }
0x176f   :  { %2778 = shalt.err (!%p2775_p7)
}
0x1770   :  { %s2795_s8 = smov 128   ;;  %s2796_s9 = smov 8  }
0x1771   :  { %2339 = dma.vmem_to_hbm [thread:$0]  %s2334_s25, 256, %s3193_s6, [#allocation3], %s2795_s8, %s2795_s8, %s2796_s9  }
0x1772   :  { %2779 = dma.done.wait [#allocation3], 256  }
0x1773   :  { %2780 = vsyncadd [#allocation3], 4294967040 }
0x1774   :  { %2343 = vsyncpa [#allocation3], 1 }

</bundles_post_ra>
